<compile_context>
chip_gen: v5e
topology: v5e:2x2
jax: 0.10.0
libtpu: 0.0.40
codegen_flags: <defaults>
</compile_context>

<pallas_src>
import functools

import jax
import jax.numpy as jnp
import numpy as np
from jax.experimental import pallas as pl
from jax.experimental.pallas import tpu as pltpu


def _classifier_kernel(h1_ref, h2_ref, wt_ref, b_ref, out_ref):
    """Fused cat + Linear for one batch tile.

    h1_ref, h2_ref : (TB, H)   activation tiles (bf16 or f32)
    wt_ref         : (2H, O)   packed, pre-transposed Linear weight (VMEM-resident)
    b_ref          : (O,)      f32 bias in SMEM
    out_ref        : (TB, O)   f32 logits tile
    """
    h = h1_ref.shape[1]
    # cat(h1, h2) @ W^T == h1 @ Wt[:H] + h2 @ Wt[H:]; static ref slices are cheap.
    acc = jnp.dot(h1_ref[...], wt_ref[:h, :], preferred_element_type=jnp.float32)
    acc = acc + jnp.dot(h2_ref[...], wt_ref[h:, :], preferred_element_type=jnp.float32)

    # Bias lives in SMEM as O scalars; build the (TB, O) broadcast on the VPU.
    ncols = out_ref.shape[1]
    col = jax.lax.broadcasted_iota(jnp.int32, acc.shape, 1)
    bias = jnp.where(col == 0, b_ref[0], jnp.float32(0.0))
    for j in range(1, ncols):
        bias = jnp.where(col == j, b_ref[j], bias)

    # TODO(synk): the (TB, 2) output tile stores via masked (lane-sparse) vst;
    # a transposed (O, TB) output would be lane-dense, but output bytes are
    # tiny here so we keep the natural layout.
    out_ref[...] = (acc + bias).astype(out_ref.dtype)


def prepare_classifier_params(w, b, activation_dtype=jnp.bfloat16):
    """One-time weight prep (hoisted out of the per-call path).

    w: (O, 2H) PyTorch nn.Linear weight layout; b: (O,).
    Returns (wt_packed, bias_f32) with wt_packed = w.T cast to activation dtype.
    """
    wt = jnp.transpose(w).astype(activation_dtype)      # (2H, O)
    return wt, b.astype(jnp.float32)


def _pick_block_rows(batch, max_rows=512):
    if batch <= max_rows:
        return batch                    # single full-array block (always legal)
    return max_rows                     # multiple of 8 (and 16 for bf16 packing)


def _vmem_limit_bytes(tb, hidden, out_cols, act_itemsize):
    # 2 activation streams x 2 pipeline buffers + weight + f32 output buffers,
    # with 2x headroom; capped below v7x's 64 MiB physical VMEM.
    est = (2 * 2 * tb * hidden * act_itemsize
           + 2 * (2 * hidden) * out_cols * act_itemsize
           + 2 * tb * out_cols * 4)
    return int(min(48 * 2**20, max(2 * est + (1 << 20), 4 * 2**20)))


@functools.partial(jax.jit, static_argnames=("block_rows",))
def classifier_forward(hidden_1, hidden_2, wt, b, block_rows=None):
    """Forward matching Classifier.forward (raw logits, no sigmoid/dropout).

    hidden_1, hidden_2: (B, H); wt: (2H, O) packed transposed weight; b: (O,).
    """
    B, H = hidden_1.shape
    two_h, O = wt.shape
    assert hidden_2.shape == (B, H)
    assert two_h == 2 * H

    act_dtype = wt.dtype
    h1 = hidden_1.astype(act_dtype)
    h2 = hidden_2.astype(act_dtype)
    bias = b.astype(jnp.float32)

    tb = _pick_block_rows(B) if block_rows is None else block_rows
    if tb < B:
        tb = max(8, (tb // 8) * 8)      # row tiles must be sublane aligned
    else:
        tb = B
    grid = (pl.cdiv(B, tb),)

    return pl.pallas_call(
        _classifier_kernel,
        out_shape=jax.ShapeDtypeStruct((B, O), jnp.float32),
        grid_spec=pltpu.PrefetchScalarGridSpec(
            num_scalar_prefetch=0,
            grid=grid,
            in_specs=[
                pl.BlockSpec((tb, H), lambda i: (i, 0)),
                pl.BlockSpec((tb, H), lambda i: (i, 0)),
                # Grid-invariant packed weight: constant index_map -> fetched
                # once, stays VMEM-resident across batch tiles.
                pl.BlockSpec((two_h, O), lambda i: (0, 0)),
                # Tiny bias: whole array in SMEM (no extra VMEM tile/DMA buffer).
                pl.BlockSpec(memory_space=pltpu.MemorySpace.SMEM),
            ],
            out_specs=pl.BlockSpec((tb, O), lambda i: (i, 0)),
        ),
        compiler_params=pltpu.CompilerParams(
            dimension_semantics=("parallel",),
            vmem_limit_bytes=_vmem_limit_bytes(
                tb, H, O, jnp.dtype(act_dtype).itemsize),
        ),
    )(h1, h2, wt, bias)


def classifier_forward_xla(hidden_1, hidden_2, wt, b):
    """Plain-XLA path with identical math (reference / tiny-batch fallback)."""
    x = jnp.concatenate(
        [hidden_1.astype(wt.dtype), hidden_2.astype(wt.dtype)], axis=1)
    return (jnp.dot(x, wt, preferred_element_type=jnp.float32)
            + b.astype(jnp.float32)[None, :])


if __name__ == "__main__":
    key = jax.random.PRNGKey(0)
    k1, k2, kw, kb, k3, k4 = jax.random.split(key, 6)

    # --- Small config consistent with Classifier(hidden_size=32) ---
    B, hidden_size, O = 2, 32, 2
    h1 = jax.random.normal(k1, (B, hidden_size), dtype=jnp.float32)
    h2 = jax.random.normal(k2, (B, hidden_size), dtype=jnp.float32)
    w = 0.1 * jax.random.normal(kw, (O, 2 * hidden_size), dtype=jnp.float32)
    b = 0.1 * jax.random.normal(kb, (O,), dtype=jnp.float32)

    wt, bias = prepare_classifier_params(w, b)           # one-time weight prep
    out = jax.block_until_ready(classifier_forward(h1, h2, wt, bias))
    assert out.shape == (B, O)

    # Matched-precision reference (same bf16 operands, f32 accumulation).
    ref = jax.block_until_ready(classifier_forward_xla(h1, h2, wt, bias))
    np.testing.assert_allclose(np.asarray(out), np.asarray(ref),
                               rtol=1e-4, atol=1e-4)
    # Loose check against full-f32 math (bf16 cast is the only delta).
    ref_f32 = jnp.concatenate([h1, h2], axis=1) @ w.T + b[None, :]
    np.testing.assert_allclose(np.asarray(out), np.asarray(ref_f32),
                               rtol=5e-2, atol=5e-2)

    # --- Exercise the batch-tiled path (multi-step grid + partial last tile) ---
    B2, H2 = 260, 128
    h1b = jax.random.normal(k3, (B2, H2), dtype=jnp.float32)
    h2b = jax.random.normal(k4, (B2, H2), dtype=jnp.float32)
    w2 = 0.1 * jax.random.normal(kw, (O, 2 * H2), dtype=jnp.float32)
    b2 = 0.1 * jax.random.normal(kb, (O,), dtype=jnp.float32)
    wt2, bias2 = prepare_classifier_params(w2, b2)
    out2 = jax.block_until_ready(
        classifier_forward(h1b, h2b, wt2, bias2, block_rows=128))
    ref2 = jax.block_until_ready(classifier_forward_xla(h1b, h2b, wt2, bias2))
    np.testing.assert_allclose(np.asarray(out2), np.asarray(ref2),
                               rtol=1e-4, atol=1e-4)

    print("KERNEL_OK")
</pallas_src>

<mosaic_0001>
module attributes {stable_mosaic.version = 11 : i64} {
  func.func @_classifier_kernel(%arg0: i32, %arg1: memref<2x32xbf16, #tpu.memory_space<vmem>>, %arg2: memref<2x32xbf16, #tpu.memory_space<vmem>>, %arg3: memref<64x2xbf16, #tpu.memory_space<vmem>>, %arg4: memref<2xf32, #tpu.memory_space<smem>>, %arg5: memref<2x2xf32, #tpu.memory_space<vmem>>) attributes {dimension_semantics = [#tpu.dimension_semantics<parallel>], iteration_bounds = array<i64: 1>, scalar_prefetch = 0 : i64, scratch_operands = 0 : i64, tpu.core_type = #tpu.core_type<tc>, window_params = [{transform_indices = @transform_0, window_bounds = array<i64: 2, 32>}, {transform_indices = @transform_1, window_bounds = array<i64: 2, 32>}, {pipeline_mode = #tpu.pipeline_mode<synchronous>, transform_indices = @transform_2, window_bounds = array<i64: 64, 2>}, {transform_indices = @transform_3, window_bounds = array<i64: 2>}, {transform_indices = @transform_4, window_bounds = array<i64: 2, 2>}]} {
    %c0 = arith.constant 0 : index
    %c0_0 = arith.constant 0 : index
    %0 = vector.load %arg1[%c0, %c0_0] : memref<2x32xbf16, #tpu.memory_space<vmem>>, vector<2x32xbf16>
    %c0_1 = arith.constant 0 : index
    %c0_2 = arith.constant 0 : index
    %1 = vector.load %arg3[%c0_1, %c0_2] : memref<64x2xbf16, #tpu.memory_space<vmem>>, vector<32x2xbf16>
    %cst = arith.constant dense<0.000000e+00> : vector<2x2xf32>
    %2 = tpu.matmul %0, %1, %cst {dimension_numbers = #tpu.dot_dimension_numbers<[1], [0], [0], [1], [0, 0, 1, 1], [], []>} : vector<2x32xbf16>, vector<32x2xbf16>, vector<2x2xf32> -> vector<2x2xf32>
    %c0_3 = arith.constant 0 : index
    %c0_4 = arith.constant 0 : index
    %3 = vector.load %arg2[%c0_3, %c0_4] : memref<2x32xbf16, #tpu.memory_space<vmem>>, vector<2x32xbf16>
    %c32 = arith.constant 32 : index
    %c0_5 = arith.constant 0 : index
    %4 = vector.load %arg3[%c32, %c0_5] : memref<64x2xbf16, #tpu.memory_space<vmem>>, vector<32x2xbf16>
    %cst_6 = arith.constant dense<0.000000e+00> : vector<2x2xf32>
    %5 = tpu.matmul %3, %4, %cst_6 {dimension_numbers = #tpu.dot_dimension_numbers<[1], [0], [0], [1], [0, 0, 1, 1], [], []>} : vector<2x32xbf16>, vector<32x2xbf16>, vector<2x2xf32> -> vector<2x2xf32>
    %6 = arith.addf %2, %5 : vector<2x2xf32>
    %7 = tpu.iota {dimensions = array<i32: 1>} : vector<2x2xi32>
    %c0_i32 = arith.constant 0 : i32
    %8 = vector.broadcast %c0_i32 : i32 to vector<2x2xi32>
    %9 = arith.cmpi eq, %7, %8 : vector<2x2xi32>
    %c0_7 = arith.constant 0 : index
    %10 = memref.load %arg4[%c0_7] : memref<2xf32, #tpu.memory_space<smem>>
    %cst_8 = arith.constant 0.000000e+00 : f32
    %11 = vector.broadcast %10 : f32 to vector<2x2xf32>
    %12 = vector.broadcast %cst_8 : f32 to vector<2x2xf32>
    %13 = arith.select %9, %11, %12 : vector<2x2xi1>, vector<2x2xf32>
    %c1_i32 = arith.constant 1 : i32
    %14 = vector.broadcast %c1_i32 : i32 to vector<2x2xi32>
    %15 = arith.cmpi eq, %7, %14 : vector<2x2xi32>
    %c1 = arith.constant 1 : index
    %16 = memref.load %arg4[%c1] : memref<2xf32, #tpu.memory_space<smem>>
    %17 = vector.broadcast %16 : f32 to vector<2x2xf32>
    %18 = arith.select %15, %17, %13 : vector<2x2xi1>, vector<2x2xf32>
    %19 = arith.addf %6, %18 : vector<2x2xf32>
    %c0_9 = arith.constant 0 : index
    %c0_10 = arith.constant 0 : index
    %20 = vector.load %arg5[%c0_9, %c0_10] : memref<2x2xf32, #tpu.memory_space<vmem>>, vector<2x2xf32>
    tpu.vector_store %arg5[%c0_9, %c0_10], %19 {strides = array<i32>} : memref<2x2xf32, #tpu.memory_space<vmem>>, vector<2x2xf32>,
    return
  }
  func.func @transform_0(%arg0: i32) -> (i32, i32) {
    %c0_i32 = arith.constant 0 : i32
    %c0_i32_0 = arith.constant 0 : i32
    return %arg0, %c0_i32 : i32, i32
  }
  func.func @transform_1(%arg0: i32) -> (i32, i32) {
    %c0_i32 = arith.constant 0 : i32
    %c0_i32_0 = arith.constant 0 : i32
    return %arg0, %c0_i32 : i32, i32
  }
  func.func @transform_2(%arg0: i32) -> (i32, i32) {
    %c0_i32 = arith.constant 0 : i32
    %c0_i32_0 = arith.constant 0 : i32
    %c0_i32_1 = arith.constant 0 : i32
    return %c0_i32, %c0_i32_0 : i32, i32
  }
  func.func @transform_3(%arg0: i32) -> i32 {
    %c0_i32 = arith.constant 0 : i32
    %c0_i32_0 = arith.constant 0 : i32
    return %c0_i32 : i32
  }
  func.func @transform_4(%arg0: i32) -> (i32, i32) {
    %c0_i32 = arith.constant 0 : i32
    %c0_i32_0 = arith.constant 0 : i32
    return %arg0, %c0_i32 : i32, i32
  }
}

</mosaic_0001>

<bundles_post_ra>
// kernel: classifier_forward.1
= control target key start
LH: loop header
LB: loop body
LE: loop exit
PB: predicated region body
PF: predicated region fallthrough
CT: control target
= control target key end

     0   :  { %9 = vsyncpa [#allocation4], 0  ;;  %s245_s0 = inlined_call_operand.vmem [shape: bf16[2,32], index: 0, kind: input, shape index: {}]   ;;  %s246_s1 = inlined_call_operand.vmem [shape: bf16[2,32], index: 1, kind: input, shape index: {}]   ;;  %s247_s2 = inlined_call_operand.vmem [shape: bf16[64,2], index: 2, kind: input, shape index: {}]   ;;  %s248_s3 = inlined_call_operand.vmem [shape: f32[2], index: 3, kind: input, shape index: {}]   ;;  %s249_s4 = inlined_call_operand.hbm [shape: f32[2,2], index: 4, kind: output, shape index: {}]  }
   0x1   :  { %10 = vsyncpa [#allocation3], 0  ;;  %s22_s17 = sshll.u32 %s248_s3, 4  ;;  %s194_s18 = smov [#allocation2]   ;;  %s23_s17 = int_to_ptr.vmem [resolvable:$true] %s22_s17 }
   0x2   :  { %25 = dma.vmem_to_smem %s23_s17, 16, %s194_s18, [#allocation4]  }
   0x3   :  { %190 = dma.done.wait [#allocation4], 16  }
   0x4   :  { %191 = vsyncadd [#allocation4], 4294967280 }
   0x5   :  { %30 = sfence }
   0x6   :  { %v151_v0 = vld [vmem:[%s247_s2 + $0x18] sm:$0xff]  ;;  %v149_v1 = vld [vmem:[%s247_s2 + $0x8] sm:$0xff]  ;;  %v150_v2 = vld [vmem:[%s247_s2 + $0x10] sm:$0xff]  ;;  %vm54_vm0 = vcmask 261120   ;;  %v99_v6 = vlaneseq  ;;  %s102_s30 = sld [smem:[#allocation2]]  ;;  %vm110_vm3 = vcmask 9216  }
   0x7   :  { %64 = vmatpush.bf16.msra.mxu0 %v151_v0  ;;  %92 = vmatpush.bf16.msra.mxu1 %v149_v1  ;;  %v148_v3 = vld [vmem:[%s247_s2] sm:$0xff]  ;;  %s147_s5 = sld [smem:[#allocation2 + $0x1]] }
   0x8   :  { %v37_v4 = vld [vmem:[%s246_s1] sm:$0x1]  ;;  %v100_v7 = vand.u32 127, %v99_v6  ;;  %s195_s1 = smov [#allocation5]  }
   0x9   :  { %v32_v5 = vld [vmem:[%s245_s0] sm:$0x1]  ;;  %s117_s2 = sshll.u32 %s195_s1, 4  ;;  %s119_s0 = sshll.u32 %s249_s4, 4  ;;  %s118_s2 = int_to_ptr.vmem [resolvable:$true] %s117_s2  ;;  %s120_s0 = int_to_ptr.hbm [resolvable:$true] %s119_s0 }
   0xa   :  { %vm101_vm1 = vcmp.eq.s32.totalorder %v100_v7, 0  ;;  %vm105_vm2 = vcmp.eq.s32.totalorder %v100_v7, 1 }
   0xb   :  { %65 = vmatpush.bf16.msra.mxu0 %v150_v2  ;;  %93 = vmatpush.bf16.msra.mxu1 %v148_v3 }
   0xc   :  { %v103_v8 = vstv %s102_s30 }
   0xd   :  { %v104_v9 = vsel %vm101_vm1, %v103_v8, 0.0  ;;  %v107_v10 = vstv %s147_s5 }
   0xe   :  { %137 = vmatmul.msk.bf16.vlgmr.msra.gmra.mxu0 %vm54_vm0, %v37_v4  ;;  %146 = vmatmul.msk.bf16.vlgmr.msra.gmra.mxu1 %vm54_vm0, %v32_v5  ;;  %v108_v13 = vsel %vm105_vm2, %v107_v10, %v104_v9 }
  0x8b   :  { %v67_v11 = vpop.f32.mrf.mxu0  ;;  %v95_v12 = vpop.f32.mrf.mxu1 }
  0x8c   :  { %v96_v14 = vadd.f32 %v95_v12, %v67_v11 }
  0x8e   :  { %v109_v15 = vadd.f32 %v108_v13, %v96_v14 }
  0x90   :  { %111 = vst.msk [vmem:[#allocation5] sm:$0x3] %vm110_vm3, %v109_v15 }
  0x91   :  { %122 = dma.vmem_to_hbm [thread:$0]  %s118_s2, 32, %s120_s0, [#allocation3]  }
  0x93   :  { %v69_v16 = vpop.f32.mrf.mxu0  ;;  %v97_v17 = vpop.f32.mrf.mxu1 }
  0x94   :  { %192 = dma.done.wait [#allocation3], 32  }
  0x95   :  { %193 = vsyncadd [#allocation3], 4294967264 }
  0x96   :  { %127 = vsyncpa [#allocation3], 1 }
  0x97   :  { %128 = vsyncpa [#allocation4], 1 }

</bundles_post_ra>
